<compile_context>
chip_gen: v7x
topology: tpu7x:2x2x1
jax: 0.10.0
libtpu: 0.0.40
codegen_flags: <defaults>
</compile_context>

<pallas_src>
import functools

import jax
import jax.numpy as jnp
from jax.experimental import pallas as pl
from jax.experimental.pallas import tpu as pltpu


def _round_up(x, m):
    return (x + m - 1) // m * m


def _resident_spec(block_shape, index_map):
    """BlockSpec for a grid-invariant operand; single-buffered to save VMEM when supported."""
    try:
        return pl.BlockSpec(block_shape, index_map, pipeline_mode=pl.Buffered(1))
    except TypeError:  # fall back to default double-buffering on older jax
        return pl.BlockSpec(block_shape, index_map)


def pconv_stats_kernel(patches_ref, w_ref, out_ref, mean_ref, m2_ref, *, n_rows, tile_n):
    """Partial-conv matmul (ratio pre-folded into patches) + per-tile Welford BN stats."""
    i = pl.program_id(0)
    conv = jnp.dot(patches_ref[...], w_ref[...],
                   preferred_element_type=jnp.float32)             # (TILE_N, Cp) f32

    # Only rows < N are real; explicitly exclude padded rows from the statistics.
    valid = jnp.minimum(tile_n, n_rows - i * tile_n)
    row_ok = jax.lax.broadcasted_iota(jnp.int32, (tile_n, 1), 0) < valid
    cm = jnp.where(row_ok, conv, 0.0)

    out_ref[...] = cm.astype(out_ref.dtype)                        # bf16 writeback

    s = jnp.sum(cm, axis=0, keepdims=True)                         # (1, Cp)
    mean = s / valid.astype(jnp.float32)
    d = jnp.where(row_ok, cm - mean, 0.0)                          # centered, padded rows -> 0
    mean_ref[...] = mean[None]                                     # (1, 1, Cp)
    m2_ref[...] = jnp.sum(d * d, axis=0, keepdims=True)[None]      # (1, 1, Cp)


def _im2col_nhwc(x_nchw, k, stride, pad):
    """NCHW -> (B*Ho*Wo, k*k*C) patch matrix, kernel-position major / channel minor."""
    x = jnp.transpose(x_nchw, (0, 2, 3, 1))                        # NHWC
    x = jnp.pad(x, ((0, 0), (pad, pad), (pad, pad), (0, 0)))
    B, Hp, Wp, C = x.shape
    Ho = (Hp - k) // stride + 1
    Wo = (Wp - k) // stride + 1
    cols = []
    for i in range(k):
        for j in range(k):
            cols.append(x[:, i:i + stride * (Ho - 1) + 1:stride,
                          j:j + stride * (Wo - 1) + 1:stride, :])  # (B, Ho, Wo, C)
    p = jnp.stack(cols, axis=3)                                    # (B, Ho, Wo, k*k, C)
    return p.reshape(B * Ho * Wo, k * k * C), (B, Ho, Wo)


# Scoped-VMEM budget: above the v5e/v6e defaults (16/32 MiB), below v7x's 64 MiB physical so
# there is headroom for compiler scratch.  On v5e/v6e (128 MiB physical) it can be raised
# further together with a larger tile_n for shallow layers.
_VMEM_LIMIT_BYTES = 48 * 1024 * 1024


@functools.partial(jax.jit, static_argnames=("stride", "padding", "tile_n"))
def encoder_block(x, mask, weight, gamma, beta, *, stride, padding, tile_n=1024):
    """x: (B, C_in, H, W), mask: (B, 1 or C_in, H, W). Returns (out, updated_mask) in NCHW."""
    B, C_in, H, W = x.shape
    C_out, _, k, _ = weight.shape

    if mask.shape[1] == 1 and C_in > 1:
        mask_full = jnp.broadcast_to(mask, (B, C_in, H, W))
    else:
        mask_full = mask
    masked_x = x * mask_full

    # mask_conv(mask) with an all-ones kernel: sum channels first so its im2col is only k*k wide.
    mask_csum = jnp.sum(mask_full.astype(jnp.float32), axis=1, keepdims=True)    # (B,1,H,W)
    mcols, _ = _im2col_nhwc(mask_csum, k, stride, padding)                       # (N, k*k)
    msum = jnp.sum(mcols, axis=-1, keepdims=True)                                # (N, 1)

    patches_f32, (_, Ho, Wo) = _im2col_nhwc(masked_x, k, stride, padding)        # (N, K) f32
    N = B * Ho * Wo
    K = k * k * C_in
    Cp = _round_up(C_out, 128)                      # minimal lane-dense channel padding
    window_size = float(C_in * k * k)

    # Fold the per-output-pixel renormalisation r into the patch rows: (P @ W) * r == (P*r) @ W.
    # Under jit the mask-mul / im2col / scale / bf16-cast / pad chain fuses into a single XLA
    # write of the bf16 patch buffer.
    ratio = window_size / (msum + 1e-8)                                           # (N, 1) f32
    patches = (patches_f32 * ratio).astype(jnp.bfloat16)                          # (N, K) bf16

    # Weight as (K, Cp) bf16, channel-padded to the 128-lane multiple.
    w2d = jnp.transpose(weight, (2, 3, 1, 0)).reshape(K, C_out)
    w2d = jnp.pad(w2d, ((0, 0), (0, Cp - C_out))).astype(jnp.bfloat16)

    # Row tiling: at least 2 tiles (v7x megacore balance) and capped by a VMEM budget so deep
    # layers shrink the tile instead of overflowing the scoped limit.
    # TODO(synk): for very large K add a K grid axis ("arbitrary") with an f32 acc scratch
    # instead of shrinking TILE_N further.
    bytes_per_row = 2 * K * 2 + 2 * Cp * 2          # double-buffered bf16 patches + bf16 out
    weight_bytes = K * Cp * 2
    budget = (_VMEM_LIMIT_BYTES * 3) // 4 - 2 * weight_bytes
    tile_cap = max(16, (budget // bytes_per_row) // 16 * 16)
    TILE_N = max(16, min(tile_n, _round_up(-(-N // 2), 16), tile_cap))
    N_pad = _round_up(N, TILE_N)
    num_tiles = N_pad // TILE_N
    patches_p = jnp.pad(patches, ((0, N_pad - N), (0, 0)))

    kern = functools.partial(pconv_stats_kernel, n_rows=N, tile_n=TILE_N)
    cost = pl.CostEstimate(
        flops=2 * N_pad * K * Cp,
        transcendentals=0,
        bytes_accessed=N_pad * K * 2 + K * Cp * 2 + N_pad * Cp * 2 + 2 * num_tiles * Cp * 4)

    conv_out, mean_parts, m2_parts = pl.pallas_call(
        kern,
        out_shape=(jax.ShapeDtypeStruct((N_pad, Cp), jnp.bfloat16),
                   jax.ShapeDtypeStruct((num_tiles, 1, Cp), jnp.float32),
                   jax.ShapeDtypeStruct((num_tiles, 1, Cp), jnp.float32)),
        grid_spec=pltpu.PrefetchScalarGridSpec(
            num_scalar_prefetch=0,
            grid=(num_tiles,),
            in_specs=[pl.BlockSpec((TILE_N, K), lambda i: (i, 0)),
                      _resident_spec((K, Cp), lambda i: (0, 0))],   # weight stays resident
            out_specs=(pl.BlockSpec((TILE_N, Cp), lambda i: (i, 0)),
                       pl.BlockSpec((1, 1, Cp), lambda i: (i, 0, 0)),
                       pl.BlockSpec((1, 1, Cp), lambda i: (i, 0, 0)))),
        compiler_params=pltpu.CompilerParams(
            dimension_semantics=("parallel",),
            vmem_limit_bytes=_VMEM_LIMIT_BYTES),
        cost_estimate=cost,
    )(patches_p, w2d)

    # ---- Chan/Welford combine of per-tile stats + fold gamma/beta into (scale, shift) --------
    counts = jnp.minimum(TILE_N, N - jnp.arange(num_tiles) * TILE_N).astype(jnp.float32)
    means = mean_parts[:, 0, :C_out]
    m2s = m2_parts[:, 0, :C_out]
    n_f = jnp.float32(N)
    mean = jnp.sum(counts[:, None] * means, axis=0) / n_f
    m2 = jnp.sum(m2s, axis=0) + jnp.sum(counts[:, None] * (means - mean) ** 2, axis=0)
    var = m2 / n_f                                   # biased variance (BatchNorm train mode)
    inv = jax.lax.rsqrt(var + 1e-5)
    scale = gamma.astype(jnp.float32) * inv
    shift = beta.astype(jnp.float32) - mean * scale

    # ---- Epilogue: BN affine + LeakyReLU, fused by XLA with the slice + NHWC->NCHW transpose ----
    # (No separate Pallas pass: removes one full read+write of the (N_pad, Cp) intermediate.)
    y = conv_out[:N, :C_out].astype(jnp.float32) * scale + shift
    y = jnp.where(y > 0, y, 0.2 * y)
    out = y.reshape(B, Ho, Wo, C_out).transpose(0, 3, 1, 2)                       # NCHW

    new_mask = jnp.clip(msum, 0.0, 1.0).reshape(B, Ho, Wo, 1).transpose(0, 3, 1, 2)
    # NOTE: the C_out-replicated mask matches the PyTorch contract; consumers that accept a
    # 1-channel mask should drop this broadcast (it is a redundant HBM write).
    new_mask = jnp.broadcast_to(new_mask, (B, C_out, Ho, Wo))
    return out, new_mask


def _reference(x, mask, weight, gamma, beta, *, stride, padding):
    """Pure-JAX (f32) reference replicating the PyTorch EncoderBlock forward."""
    B, C_in, H, W = x.shape
    C_out, _, k, _ = weight.shape
    mask_full = jnp.broadcast_to(mask, (B, C_in, H, W))
    masked = x * mask_full
    dn = ('NCHW', 'OIHW', 'NCHW')
    conv = jax.lax.conv_general_dilated(masked, weight, (stride, stride),
                                        [(padding, padding)] * 2, dimension_numbers=dn)
    ones_w = jnp.ones((1, C_in, k, k), jnp.float32)
    msum = jax.lax.conv_general_dilated(mask_full, ones_w, (stride, stride),
                                        [(padding, padding)] * 2, dimension_numbers=dn)
    ratio = float(C_in * k * k) / (msum + 1e-8)
    o = conv * ratio
    mean = o.mean(axis=(0, 2, 3), keepdims=True)
    var = ((o - mean) ** 2).mean(axis=(0, 2, 3), keepdims=True)
    y = (o - mean) * jax.lax.rsqrt(var + 1e-5)
    y = y * gamma.reshape(1, -1, 1, 1) + beta.reshape(1, -1, 1, 1)
    y = jnp.where(y > 0, y, 0.2 * y)
    upd = jnp.broadcast_to(jnp.clip(msum, 0.0, 1.0), (B, C_out, o.shape[2], o.shape[3]))
    return y, upd


if __name__ == "__main__":
    key = jax.random.PRNGKey(0)
    B, C_in, H, W = 2, 4, 16, 16
    C_out, k, stride, pad = 8, 3, 2, 1

    kx, km, kw = jax.random.split(key, 3)
    x = jax.random.normal(kx, (B, C_in, H, W), jnp.float32)
    mask = (jax.random.uniform(km, (B, 1, H, W)) > 0.3).astype(jnp.float32)

    # PartialConv2d weight (bias=False); BatchNorm gamma=1, beta=0 (torch default init).
    weight = 0.1 * jax.random.normal(kw, (C_out, C_in, k, k), jnp.float32)
    gamma = jnp.ones((C_out,), jnp.float32)
    beta = jnp.zeros((C_out,), jnp.float32)

    out, new_mask = encoder_block(x, mask, weight, gamma, beta, stride=stride, padding=pad)
    jax.block_until_ready((out, new_mask))

    ref_out, ref_mask = _reference(x, mask, weight, gamma, beta, stride=stride, padding=pad)
    assert out.shape == ref_out.shape and new_mask.shape == ref_mask.shape
    # bf16 MXU inputs + bf16 intermediate storage -> looser tolerance than a pure-f32 comparison.
    assert jnp.allclose(out, ref_out, atol=5e-2, rtol=5e-2), "output mismatch vs reference"
    assert jnp.allclose(new_mask, ref_mask, atol=1e-6), "mask mismatch vs reference"

    print("KERNEL_OK")
</pallas_src>

<mosaic_0001>
module attributes {stable_mosaic.version = 11 : i64} {
  func.func @pconv_stats_kernel(%arg0: i32, %arg1: memref<64x36xbf16, #tpu.memory_space<vmem>>, %arg2: memref<36x128xbf16, #tpu.memory_space<vmem>>, %arg3: memref<64x128xbf16, #tpu.memory_space<vmem>>, %arg4: memref<1x1x128xf32, #tpu.memory_space<vmem>>, %arg5: memref<1x1x128xf32, #tpu.memory_space<vmem>>) attributes {dimension_semantics = [#tpu.dimension_semantics<parallel>], iteration_bounds = array<i64: 2>, scalar_prefetch = 0 : i64, scratch_operands = 0 : i64, tpu.core_type = #tpu.core_type<tc>, window_params = [{transform_indices = @transform_0, window_bounds = array<i64: 64, 36>}, {pipeline_mode = #tpu.pipeline_mode<synchronous>, transform_indices = @transform_1, window_bounds = array<i64: 36, 128>}, {transform_indices = @transform_2, window_bounds = array<i64: 64, 128>}, {transform_indices = @transform_3, window_bounds = array<i64: 1, 1, 128>}, {transform_indices = @transform_4, window_bounds = array<i64: 1, 1, 128>}]} {
    %c0 = arith.constant 0 : index
    %c0_0 = arith.constant 0 : index
    %0 = vector.load %arg1[%c0, %c0_0] : memref<64x36xbf16, #tpu.memory_space<vmem>>, vector<64x36xbf16>
    %c0_1 = arith.constant 0 : index
    %c0_2 = arith.constant 0 : index
    %1 = vector.load %arg2[%c0_1, %c0_2] : memref<36x128xbf16, #tpu.memory_space<vmem>>, vector<36x128xbf16>
    %cst = arith.constant dense<0.000000e+00> : vector<64x128xf32>
    %2 = tpu.matmul %0, %1, %cst {dimension_numbers = #tpu.dot_dimension_numbers<[1], [0], [0], [1], [0, 0, 1, 1], [], []>} : vector<64x36xbf16>, vector<36x128xbf16>, vector<64x128xf32> -> vector<64x128xf32>
    %c64_i32 = arith.constant 64 : i32
    %3 = arith.muli %arg0, %c64_i32 : i32
    %c128_i32 = arith.constant 128 : i32
    %4 = arith.subi %c128_i32, %3 : i32
    %c64_i32_3 = arith.constant 64 : i32
    %5 = arith.minsi %c64_i32_3, %4 : i32
    %6 = tpu.iota {dimensions = array<i32: 0>} : vector<64x1xi32>
    %7 = vector.broadcast %5 : i32 to vector<64x1xi32>
    %8 = arith.cmpi slt, %6, %7 : vector<64x1xi32>
    %cst_4 = arith.constant 0.000000e+00 : f32
    %9 = vector.shape_cast %8 : vector<64x1xi1> to vector<64x1xi1>
    %10 = vector.broadcast %9 : vector<64x1xi1> to vector<64x128xi1>
    %11 = vector.broadcast %cst_4 : f32 to vector<64x128xf32>
    %12 = arith.select %10, %2, %11 : vector<64x128xi1>, vector<64x128xf32>
    %13 = arith.truncf %12 : vector<64x128xf32> to vector<64x128xbf16>
    %c0_5 = arith.constant 0 : index
    %c0_6 = arith.constant 0 : index
    %14 = vector.load %arg3[%c0_5, %c0_6] : memref<64x128xbf16, #tpu.memory_space<vmem>>, vector<64x128xbf16>
    tpu.vector_store %arg3[%c0_5, %c0_6], %13 {strides = array<i32>} : memref<64x128xbf16, #tpu.memory_space<vmem>>, vector<64x128xbf16>,
    %cst_7 = arith.constant dense<0.000000e+00> : vector<128xf32>
    %15 = vector.multi_reduction <add>, %12, %cst_7 [0] : vector<64x128xf32> to vector<128xf32>
    %16 = vector.shape_cast %15 : vector<128xf32> to vector<1x128xf32>
    %17 = arith.sitofp %5 : i32 to f32
    %18 = vector.broadcast %17 : f32 to vector<1x128xf32>
    %19 = arith.divf %16, %18 : vector<1x128xf32>
    %20 = vector.broadcast %19 : vector<1x128xf32> to vector<64x128xf32>
    %21 = arith.subf %12, %20 : vector<64x128xf32>
    %cst_8 = arith.constant 0.000000e+00 : f32
    %22 = vector.shape_cast %8 : vector<64x1xi1> to vector<64x1xi1>
    %23 = vector.broadcast %22 : vector<64x1xi1> to vector<64x128xi1>
    %24 = vector.broadcast %cst_8 : f32 to vector<64x128xf32>
    %25 = arith.select %23, %21, %24 : vector<64x128xi1>, vector<64x128xf32>
    %26 = vector.shape_cast %19 : vector<1x128xf32> to vector<1x1x128xf32>
    %c0_9 = arith.constant 0 : index
    %c0_10 = arith.constant 0 : index
    %c0_11 = arith.constant 0 : index
    %27 = vector.load %arg4[%c0_9, %c0_10, %c0_11] : memref<1x1x128xf32, #tpu.memory_space<vmem>>, vector<1x1x128xf32>
    tpu.vector_store %arg4[%c0_9, %c0_10, %c0_11], %26 {strides = array<i32>} : memref<1x1x128xf32, #tpu.memory_space<vmem>>, vector<1x1x128xf32>,
    %28 = arith.mulf %25, %25 : vector<64x128xf32>
    %cst_12 = arith.constant dense<0.000000e+00> : vector<128xf32>
    %29 = vector.multi_reduction <add>, %28, %cst_12 [0] : vector<64x128xf32> to vector<128xf32>
    %30 = vector.shape_cast %29 : vector<128xf32> to vector<1x128xf32>
    %31 = vector.shape_cast %30 : vector<1x128xf32> to vector<1x1x128xf32>
    %c0_13 = arith.constant 0 : index
    %c0_14 = arith.constant 0 : index
    %c0_15 = arith.constant 0 : index
    %32 = vector.load %arg5[%c0_13, %c0_14, %c0_15] : memref<1x1x128xf32, #tpu.memory_space<vmem>>, vector<1x1x128xf32>
    tpu.vector_store %arg5[%c0_13, %c0_14, %c0_15], %31 {strides = array<i32>} : memref<1x1x128xf32, #tpu.memory_space<vmem>>, vector<1x1x128xf32>,
    return
  }
  func.func @transform_0(%arg0: i32) -> (i32, i32) {
    %c0_i32 = arith.constant 0 : i32
    %c0_i32_0 = arith.constant 0 : i32
    return %arg0, %c0_i32 : i32, i32
  }
  func.func @transform_1(%arg0: i32) -> (i32, i32) {
    %c0_i32 = arith.constant 0 : i32
    %c0_i32_0 = arith.constant 0 : i32
    %c0_i32_1 = arith.constant 0 : i32
    return %c0_i32, %c0_i32_0 : i32, i32
  }
  func.func @transform_2(%arg0: i32) -> (i32, i32) {
    %c0_i32 = arith.constant 0 : i32
    %c0_i32_0 = arith.constant 0 : i32
    return %arg0, %c0_i32 : i32, i32
  }
  func.func @transform_3(%arg0: i32) -> (i32, i32, i32) {
    %c0_i32 = arith.constant 0 : i32
    %c0_i32_0 = arith.constant 0 : i32
    %c0_i32_1 = arith.constant 0 : i32
    return %arg0, %c0_i32, %c0_i32_0 : i32, i32, i32
  }
  func.func @transform_4(%arg0: i32) -> (i32, i32, i32) {
    %c0_i32 = arith.constant 0 : i32
    %c0_i32_0 = arith.constant 0 : i32
    %c0_i32_1 = arith.constant 0 : i32
    return %arg0, %c0_i32, %c0_i32_0 : i32, i32, i32
  }
}

</mosaic_0001>

<bundles_post_ra>
// kernel: encoder_block.1
= control target key start
LH: loop header
LB: loop body
LE: loop exit
PB: predicated region body
PF: predicated region fallthrough
CT: control target
= control target key end

     0   :  { %s738_s15 = smov 0   ;;  %s885_s0 = inlined_call_operand.vmem [shape: bf16[128,36], index: 0, kind: input, shape index: {}]   ;;  %s886_s1 = inlined_call_operand.vmem [shape: bf16[36,128], index: 1, kind: input, shape index: {}]   ;;  %s887_s2 = inlined_call_operand.vmem [shape: bf16[128,128], index: 2, kind: output, shape index: {0}]   ;;  %s888_s3 = inlined_call_operand.vmem [shape: f32[2,1,128], index: 3, kind: output, shape index: {1}]   ;;  %s889_s4 = inlined_call_operand.vmem [shape: f32[2,1,128], index: 4, kind: output, shape index: {2}]  }
   0x1 LB: > { %s744_s16 = sadd.s32 4294967295, %s711_s15   ;;  %p601_p0 = scmp.ge.s32.totalorder %s711_s15, 1  ;;  %s711_s15 = sphi %s738_s15, %s15_s15  }
   0x2   : > { %p168_p1 = scmp.lt.s32.totalorder %s711_s15, 3 }
   0x4   : > { %p169_p2 = pnand %p601_p0, %p168_p1 }
   0x5   : > { %v696_v0 = vld [vmem:[%s886_s1] sm:$0xff] (!%p169_p2)   ;;  %v697_v1 = vld [vmem:[%s886_s1 + $0x8] sm:$0xff] (!%p169_p2)   ;;  %s602_s21 = sshll.u32 (!%p169_p2), %s744_s16, 3  ;;  %v698_v2 = vld [vmem:[%s886_s1 + $0x10] ss:$0 sps:$4 sm:$0x33] (!%p169_p2)   ;;  %v353_v8 = vlaneseq (!%p169_p2) }
   0x6   : > { %172 = sbr.rel (%p169_p2) target bundleno = 294 (0x126), region = 28  ;;  %666 = vmatprep.subr.bf16.mxu0 (!%p169_p2), %v696_v0  ;;  %680 = vmatprep.subr.bf16.mxu1 (!%p169_p2), %v696_v0  ;;  %p201_p3 = scmp.lt.s32.totalorder (!%p169_p2), %s602_s21, 15  ;;  %vm280_vm0 = vcmask (!%p169_p2), 1041408   ;;  %vm267_vm1 = vcmask (!%p169_p2), 293888  }
   0x7   : > { %667 = vmatpush3.bf16.msra.mxu0 (!%p169_p2), %v696_v0  ;;  %683 = vmatpush3.bf16.msra.mxu1 (!%p169_p2), %v696_v0  ;;  %v282_v3 = vsel (!%p169_p2), %vm280_vm0, %v698_v2, 0  ;;  %s617_s28 = sshll.u32 (!%p169_p2), %s744_s16, 6  ;;  %v767_v9 = vshrl.u32 (!%p169_p2), %v353_v8, 7  ;;  %p212_p5 = scmp.lt.s32.totalorder (!%p169_p2), %s744_s16, 1 }
   0x8   : > { %668 = vmatprep.subr.bf16.mxu0 (!%p169_p2), %v697_v1  ;;  %681 = vmatprep.subr.bf16.mxu1 (!%p169_p2), %v697_v1  ;;  %s350_s29 = ssub.s32 (!%p169_p2), 128, %s617_s28 }
   0x9   : > { %p351_p4 = scmp.lt.s32.totalorder (!%p169_p2), %s350_s29, 64  ;;  %v772_v10 = vadd.s32 (!%p169_p2), 48, %v767_v9  ;;  %v775_v11 = vadd.s32 (!%p169_p2), 32, %v767_v9  ;;  %v778_v12 = vadd.s32 (!%p169_p2), 16, %v767_v9  ;;  %v781_v13 = vadd.s32 (!%p169_p2), 24, %v767_v9 }
   0xa   : > { %v784_v14 = vadd.s32 (!%p169_p2), 56, %v767_v9  ;;  %v790_v16 = vadd.s32 (!%p169_p2), 8, %v767_v9  ;;  %v793_v17 = vadd.s32 (!%p169_p2), 40, %v767_v9 }
   0xb   : > { %669 = vmatpush3.bf16.msra.mxu0 (!%p169_p2), %v697_v1  ;;  %684 = vmatpush3.bf16.msra.mxu1 (!%p169_p2), %v697_v1 }
   0xc   : > { %686 = vmatprep.subr.msk.bf16.mxu0 (!%p169_p2), %vm280_vm0, %v698_v2  ;;  %687 = vmatprep.subr.msk.bf16.mxu1 (!%p169_p2), %vm280_vm0, %v698_v2 }
   0xd   : > { %s891_s21 = smov (!%p201_p3, %s602_s21), 15  ;;  %s893_s29 = smov (!%p351_p4, %s350_s29), 64 }
   0xe   : > { %s603_s24 = sshll.u32 %s891_s21, 2  ;;  %v787_v15 = vstv %s893_s29  ;;  %s448_s7 = scvt.s32.f32 %s893_s29 }
   0xf   : > { %s204_s27 = scalar_lea.vmem %s885_s0, %s603_s24  ;;  %671 = vmatpush3.bf16.msra.mxu0 %v282_v3  ;;  %685 = vmatpush3.bf16.msra.mxu1 %v282_v3  ;;  %vm369_vm2 = vcmp.lt.s32.totalorder %v772_v10, %v787_v15  ;;  %vm367_vm3 = vcmp.lt.s32.totalorder %v775_v11, %v787_v15  ;;  %vm365_vm4 = vcmp.lt.s32.totalorder %v778_v12, %v787_v15  ;;  %s210_s6 = scalar_lea.vmem %s887_s2, %s603_s24 }
  0x10   : > { %v699_v4 = vld [vmem:[%s204_s27] sm:$0xff]   ;;  %v700_v5 = vld [vmem:[%s204_s27 + $0x8] sm:$0xff]   ;;  %v701_v6 = vld [vmem:[%s204_s27 + $0x10] sm:$0xff]   ;;  %vm363_vm5 = vcmp.lt.s32.totalorder %v767_v9, %v787_v15  ;;  %vm366_vm6 = vcmp.lt.s32.totalorder %v781_v13, %v787_v15  ;;  %vm370_vm7 = vcmp.lt.s32.totalorder %v784_v14, %v787_v15  ;;  %vm364_vm8 = vcmp.lt.s32.totalorder %v790_v16, %v787_v15  ;;  %s895_s16 = smov (!%p212_p5, %s744_s16), 1 }
  0x11   : > { %672 = vmatprep.mubr.msk.bf16.mxu0 %vm267_vm1, %v699_v4  ;;  %v702_v7 = vld [vmem:[%s204_s27 + $0x18] sm:$0xff]   ;;  %676 = vmatprep.mubr.msk.bf16.mxu1 %vm267_vm1, %v701_v6  ;;  %vm368_vm9 = vcmp.lt.s32.totalorder %v793_v17, %v787_v15  ;;  %v449_v43 = vstv %s448_s7  ;;  %s214_s10 = scalar_lea.vmem %s888_s3, %s895_s16  ;;  %s217_s13 = scalar_lea.vmem %s889_s4, %s895_s16 }
  0x12   : > { %673 = vmatmul.mubr.msk.bf16.vlgmr.msra.gmra.mrb[0].mxu0 %vm267_vm1, %v700_v5  ;;  %677 = vmatmul.mubr.msk.bf16.vlgmr.msra.gmra.mrb[0].mxu1 %vm267_vm1, %v702_v7  ;;  %703 = vrcp.f32 %v449_v43 }
  0x1c   : > { %v704_v51 = vpop.eup %703 }
  0xe5   : > { %v674_v18 = vpop.f32.mrb[0].mxu0  ;;  %v678_v19 = vpop.f32.mrb[0].mxu1 }
  0xe6   : > { %v318_v20 = vpop.f32.mrb[1].mxu0  ;;  %v812_v21 = vsel %vm369_vm2, %v678_v19, 0.0  ;;  %v334_v22 = vpop.f32.mrb[1].mxu1  ;;  %v389_v26 = vsel %vm365_vm4, %v674_v18, 0.0 }
  0xe7   : > { %v675_v23 = vpop.f32.mrb[2].mxu0  ;;  %v391_v24 = vsel %vm367_vm3, %v334_v22, 0.0  ;;  %v679_v25 = vpop.f32.mrb[2].mxu1  ;;  %v387_v27 = vsel %vm363_vm5, %v318_v20, 0.0 }
  0xe8   : > { %v390_v28 = vsel %vm366_vm6, %v675_v23, 0.0  ;;  %v321_v29 = vpop.f32.mrb[3].mxu0  ;;  %v394_v30 = vsel %vm370_vm7, %v679_v25, 0.0  ;;  %v337_v31 = vpop.f32.mrb[3].mxu1 }
  0xe9   : > { %v644_v32 = vpack.c.bf16 %v390_v28, %v389_v26  ;;  %v388_v33 = vsel %vm364_vm8, %v321_v29, 0.0  ;;  %v654_v34 = vpack.c.bf16 %v394_v30, %v812_v21  ;;  %v392_v35 = vsel %vm368_vm9, %v337_v31, 0.0 }
  0xea   : > { %v639_v36 = vpack.c.bf16 %v388_v33, %v387_v27  ;;  %v435_v37 = vadd.f32 %v388_v33, %v387_v27  ;;  %v649_v38 = vpack.c.bf16 %v392_v35, %v391_v24 }
  0xeb   : > { %656 = vst [vmem:[%s210_s6 + $0x8] sm:$0xff] %v644_v32   ;;  %658 = vst [vmem:[%s210_s6 + $0x18] sm:$0xff] %v654_v34  }
  0xec   : > { %640 = vst [vmem:[%s210_s6] sm:$0xff] %v639_v36   ;;  %v436_v39 = vadd.f32 %v435_v37, %v389_v26  ;;  %657 = vst [vmem:[%s210_s6 + $0x10] sm:$0xff] %v649_v38  }
  0xee   : > { %v437_v40 = vadd.f32 %v436_v39, %v390_v28 }
  0xf0   : > { %v438_v41 = vadd.f32 %v437_v40, %v391_v24 }
  0xf2   : > { %v439_v42 = vadd.f32 %v438_v41, %v392_v35 }
  0xf4   : > { %v440_v44 = vadd.f32 %v439_v42, %v812_v21 }
  0xf6   : > { %v441_v45 = vadd.f32 %v440_v44, %v394_v30 }
  0xf8   : > { %v442_v46 = vrot.slane %v441_v45, 4 }
  0xfa   : > { %v443_v47 = vadd.f32 %v442_v46, %v441_v45 }
  0xfc   : > { %v444_v48 = vrot.slane %v443_v47, 2 }
  0xfe   : > { %v445_v49 = vadd.f32 %v444_v48, %v443_v47 }
 0x100   : > { %v446_v50 = vrot.slane %v445_v49, 1 }
 0x102   : > { %v447_v52 = vadd.f32 %v446_v50, %v445_v49 }
 0x104   : > { %v451_v53 = vmul.f32 %v704_v51, %v447_v52 }
 0x106   : > { %v452_v54 = vsub.f32 %v387_v27, %v451_v53  ;;  %v453_v55 = vsub.f32 %v388_v33, %v451_v53  ;;  %v454_v56 = vsub.f32 %v389_v26, %v451_v53  ;;  %v455_v57 = vsub.f32 %v390_v28, %v451_v53  ;;  %468 = vst [vmem:[%s214_s10] sm:$0x1] %v451_v53 }
 0x107   : > { %v456_v58 = vsub.f32 %v391_v24, %v451_v53  ;;  %v457_v59 = vsub.f32 %v392_v35, %v451_v53  ;;  %v458_v60 = vsub.f32 %v812_v21, %v451_v53  ;;  %v459_v61 = vsub.f32 %v394_v30, %v451_v53 }
 0x108   : > { %v460_v62 = vsel %vm363_vm5, %v452_v54, 0.0  ;;  %v461_v63 = vsel %vm364_vm8, %v453_v55, 0.0  ;;  %v462_v0 = vsel %vm365_vm4, %v454_v56, 0.0  ;;  %v463_v3 = vsel %vm366_vm6, %v455_v57, 0.0 }
 0x109   : > { %v469_v1 = vmul.f32 %v460_v62, %v460_v62  ;;  %v470_v2 = vmul.f32 %v461_v63, %v461_v63  ;;  %v471_v4 = vmul.f32 %v462_v0, %v462_v0  ;;  %v464_v6 = vsel %vm367_vm3, %v456_v58, 0.0 }
 0x10a   : > { %v472_v7 = vmul.f32 %v463_v3, %v463_v3  ;;  %v465_v9 = vsel %vm368_vm9, %v457_v59, 0.0  ;;  %v473_v12 = vmul.f32 %v464_v6, %v464_v6  ;;  %v466_v13 = vsel %vm369_vm2, %v458_v60, 0.0 }
 0x10b   : > { %v477_v5 = vadd.f32 %v470_v2, %v469_v1  ;;  %v474_v18 = vmul.f32 %v465_v9, %v465_v9  ;;  %v467_v11 = vsel %vm370_vm7, %v459_v61, 0.0  ;;  %v475_v20 = vmul.f32 %v466_v13, %v466_v13 }
 0x10c   : > { %v476_v22 = vmul.f32 %v467_v11, %v467_v11 }
 0x10d   : > { %v478_v8 = vadd.f32 %v477_v5, %v471_v4 }
 0x10f   : > { %v479_v16 = vadd.f32 %v478_v8, %v472_v7 }
 0x111   : > { %v480_v19 = vadd.f32 %v479_v16, %v473_v12 }
 0x113   : > { %v481_v21 = vadd.f32 %v480_v19, %v474_v18 }
 0x115   : > { %v482_v23 = vadd.f32 %v481_v21, %v475_v20 }
 0x117   : > { %v483_v24 = vadd.f32 %v482_v23, %v476_v22 }
 0x119   : > { %v484_v17 = vrot.slane %v483_v24, 4 }
 0x11b   : > { %v485_v25 = vadd.f32 %v484_v17, %v483_v24 }
 0x11d   : > { %v486_v26 = vrot.slane %v485_v25, 2 }
 0x11f   : > { %v487_v27 = vadd.f32 %v486_v26, %v485_v25 }
 0x121   : > { %v488_v28 = vrot.slane %v487_v27, 1 }
 0x123   : > { %v489_v10 = vadd.f32 %v488_v28, %v487_v27 }
 0x125   : > { %490 = vst [vmem:[%s217_s13] sm:$0x1] %v489_v10 }
 0x126 PF: > { %s15_s15 = sadd.s32 1, %s711_s15  }
 0x127   : > { %p12_p6 = scmp.ge.s32.totalorder %s15_s15, 4  }
 0x129   :  { %14 = sbr.rel (!%p12_p6) target bundleno = 1 (0x1), region = 82 }

</bundles_post_ra>
